<compile_context>
chip_gen: v7x
topology: tpu7x:2x2x1
jax: 0.10.0
libtpu: 0.0.40
codegen_flags: <defaults>
</compile_context>

<pallas_src>
import functools

import jax
import jax.numpy as jnp
from jax.experimental import pallas as pl
from jax.experimental.pallas import tpu as pltpu


# ---------------------------------------------------------------------------
# Block-size helper (accounts for the *padded* VMEM footprint of a row)
# ---------------------------------------------------------------------------
def _round_up(x, m):
    return -(-x // m) * m


def _choose_block_rows(n_rows, padded_row_bytes, budget_bytes, min_steps=8):
    """Rows per block: as many as the per-buffer VMEM budget allows, while
    keeping >= min_steps grid steps when possible (pipeline depth / v7x
    dual-TensorCore work) and staying a multiple of 8 (sublane alignment).
    Any n_rows is supported because the grid uses pl.cdiv and Pallas masks
    the partial last block."""
    cap = max(8, (budget_bytes // max(padded_row_bytes, 1)) // 8 * 8)
    want = _round_up(max(1, -(-n_rows // min_steps)), 8)
    return max(8, min(cap, want, _round_up(n_rows, 8)))


# ---------------------------------------------------------------------------
# Primary: lane-dense fused kernel (flat (NF, R*T) blocks on both sides)
# ---------------------------------------------------------------------------
def _make_fused(N, F, R, T):
    NF, RT = N * F, R * T

    def kernel(x_ref, w_ref, b_ref, o_ref):
        g = x_ref.shape[0]
        x = x_ref[...].astype(jnp.float32)                     # (g, R*T)
        # on-chip 16x16 transpose: lane index r*T+t  ->  t*R+r
        xt = jnp.transpose(x.reshape(g, R, T), (0, 2, 1)).reshape(g, RT)
        h = xt * w_ref[...] + b_ref[0, 0]                      # f32 compute
        o_ref[...] = h.astype(o_ref.dtype)

    # lane-dense layout: no padding blowup; 4 B/elem conservative estimate.
    g = _choose_block_rows(NF, RT * 4, budget_bytes=2 << 20)
    grid = (pl.cdiv(NF, g),)

    def fused(x, weight, bias):
        x2 = x.reshape(NF, RT)                                  # free reshape
        # w_tiled[0, t*R + r] = weight[r]   (matches the transposed layout)
        w_tiled = jnp.tile(weight.reshape(1, R).astype(jnp.float32), (1, T))
        b = bias.reshape(1, 1).astype(jnp.float32)
        out = pl.pallas_call(
            kernel,
            out_shape=jax.ShapeDtypeStruct((NF, RT), x.dtype),
            grid=grid,
            in_specs=[
                pl.BlockSpec((g, RT), lambda i: (i, 0)),
                pl.BlockSpec((1, RT), lambda i: (0, 0)),             # resident weight
                pl.BlockSpec(memory_space=pltpu.MemorySpace.SMEM),   # scalar bias
            ],
            out_specs=pl.BlockSpec((g, RT), lambda i: (i, 0)),
            compiler_params=pltpu.CompilerParams(
                dimension_semantics=("parallel",),
                vmem_limit_bytes=32 * 1024 * 1024),
        )(x2, w_tiled, b)
        return out.reshape(N, F, T, R)

    return fused


# ---------------------------------------------------------------------------
# Fallback: previously-validated 3-D-block kernel (corrected VMEM accounting)
# ---------------------------------------------------------------------------
def _make_fallback(N, F, R, T):
    NF = N * F

    def kernel(x_ref, w_ref, b_ref, o_ref):
        xt = jnp.transpose(x_ref[...].astype(jnp.float32), (0, 2, 1))  # (g, T, R)
        o_ref[...] = (xt * w_ref[...] + b_ref[0, 0]).astype(o_ref.dtype)

    # padded footprint of one (R, T) plane: last dim padded 16 -> 128 lanes.
    padded_row_bytes = R * 128 * 4
    g = _choose_block_rows(NF, padded_row_bytes, budget_bytes=1 << 20)

    def fallback(x, weight, bias):
        x3 = x.reshape(NF, R, T)
        w_row = weight.reshape(1, R).astype(jnp.float32)
        b = bias.reshape(1, 1).astype(jnp.float32)
        out = pl.pallas_call(
            kernel,
            out_shape=jax.ShapeDtypeStruct((NF, T, R), x.dtype),
            grid=(pl.cdiv(NF, g),),
            in_specs=[
                pl.BlockSpec((g, R, T), lambda i: (i, 0, 0)),
                pl.BlockSpec((1, R), lambda i: (0, 0)),
                pl.BlockSpec(memory_space=pltpu.MemorySpace.SMEM),
            ],
            out_specs=pl.BlockSpec((g, T, R), lambda i: (i, 0, 0)),
            compiler_params=pltpu.CompilerParams(
                dimension_semantics=("parallel",),
                vmem_limit_bytes=32 * 1024 * 1024),
        )(x3, w_row, b)
        return out.reshape(N, F, T, R)

    return fallback


# ---------------------------------------------------------------------------
# Build-time implementation selection (cached per shape/dtype; no per-call
# try/except, no host sync in the hot path)
# ---------------------------------------------------------------------------
@functools.lru_cache(maxsize=None)
def _get_impl(N, F, R, T, x_dtype, w_dtype, b_dtype):
    probe_args = (jax.ShapeDtypeStruct((N, F, R, T), x_dtype),
                  jax.ShapeDtypeStruct((R, 1), w_dtype),
                  jax.ShapeDtypeStruct((1, 1), b_dtype))
    fused = jax.jit(_make_fused(N, F, R, T))
    try:
        # AOT probe: verifies Mosaic can lower & compile the lane-dense kernel.
        fused.lower(*probe_args).compile()
        return fused
    except Exception:
        # Toolchain cannot lower the in-kernel 16x16 reshape/transpose:
        # use the 3-D-block variant (still a single fused HBM pass).
        return jax.jit(_make_fallback(N, F, R, T))


# ---------------------------------------------------------------------------
# Public entry point + pure-JAX reference
# ---------------------------------------------------------------------------
def traceline_middle2d(x, weight, bias):
    """x: (N, F, R, T), weight: (R, 1), bias: (1, 1) -> (N, F, T, R)."""
    N, F, R, T = x.shape
    impl = _get_impl(N, F, R, T, jnp.dtype(x.dtype), jnp.dtype(weight.dtype),
                     jnp.dtype(bias.dtype))
    return impl(x, weight, bias)


def traceline_middle2d_ref(x, weight, bias):
    """Pure-JAX reference mirroring the PyTorch forward."""
    N, F, R, T = x.shape
    o = jnp.transpose(x, (0, 1, 3, 2)).reshape(N * F * T, R)
    h = o.astype(jnp.float32) * weight.reshape(1, R).astype(jnp.float32)
    h = h + bias.reshape(1, 1).astype(jnp.float32)
    return h.reshape(N, F, T, R).astype(x.dtype)


if __name__ == "__main__":
    key = jax.random.PRNGKey(0)
    k_x, k_w, k_b = jax.random.split(key, 3)

    # Small shapes consistent with the module: N=2, F=4, R=16, T=16
    N, F, R, T = 2, 4, 16, 16
    x = jax.random.normal(k_x, (N, F, R, T), dtype=jnp.float32)
    weight = jax.random.normal(k_w, (R, 1), dtype=jnp.float32)
    bias = jax.random.normal(k_b, (1, 1), dtype=jnp.float32)

    out = traceline_middle2d(x, weight, bias)
    out = jax.block_until_ready(out)

    ref = traceline_middle2d_ref(x, weight, bias)
    assert out.shape == (N, F, T, R)
    assert jnp.allclose(out, ref, atol=1e-6, rtol=1e-6)

    print("KERNEL_OK")
</pallas_src>

<mosaic_0001>
module attributes {stable_mosaic.version = 11 : i64} {
  func.func @kernel(%arg0: i32, %arg1: memref<8x16x16xf32, #tpu.memory_space<vmem>>, %arg2: memref<1x16xf32, #tpu.memory_space<vmem>>, %arg3: memref<1x1xf32, #tpu.memory_space<smem>>, %arg4: memref<8x16x16xf32, #tpu.memory_space<vmem>>) attributes {dimension_semantics = [#tpu.dimension_semantics<parallel>], iteration_bounds = array<i64: 1>, scalar_prefetch = 0 : i64, scratch_operands = 0 : i64, tpu.core_type = #tpu.core_type<tc>, window_params = [{transform_indices = @transform_0, window_bounds = array<i64: 8, 16, 16>}, {pipeline_mode = #tpu.pipeline_mode<synchronous>, transform_indices = @transform_1, window_bounds = array<i64: 1, 16>}, {transform_indices = @transform_2, window_bounds = array<i64: 1, 1>}, {transform_indices = @transform_3, window_bounds = array<i64: 8, 16, 16>}]} {
    %c0 = arith.constant 0 : index
    %c0_0 = arith.constant 0 : index
    %c0_1 = arith.constant 0 : index
    %0 = vector.load %arg1[%c0, %c0_0, %c0_1] : memref<8x16x16xf32, #tpu.memory_space<vmem>>, vector<8x16x16xf32>
    %1 = tpu.transpose %0, [0, 2, 1] : vector<8x16x16xf32> -> vector<8x16x16xf32>
    %c0_2 = arith.constant 0 : index
    %c0_3 = arith.constant 0 : index
    %2 = vector.load %arg2[%c0_2, %c0_3] : memref<1x16xf32, #tpu.memory_space<vmem>>, vector<1x16xf32>
    %3 = vector.shape_cast %2 : vector<1x16xf32> to vector<1x1x16xf32>
    %4 = vector.broadcast %3 : vector<1x1x16xf32> to vector<8x16x16xf32>
    %5 = arith.mulf %1, %4 : vector<8x16x16xf32>
    %c0_4 = arith.constant 0 : index
    %c0_5 = arith.constant 0 : index
    %6 = memref.load %arg3[%c0_4, %c0_5] : memref<1x1xf32, #tpu.memory_space<smem>>
    %7 = vector.broadcast %6 : f32 to vector<8x16x16xf32>
    %8 = arith.addf %5, %7 : vector<8x16x16xf32>
    %c0_6 = arith.constant 0 : index
    %c0_7 = arith.constant 0 : index
    %c0_8 = arith.constant 0 : index
    %9 = vector.load %arg4[%c0_6, %c0_7, %c0_8] : memref<8x16x16xf32, #tpu.memory_space<vmem>>, vector<8x16x16xf32>
    tpu.vector_store %arg4[%c0_6, %c0_7, %c0_8], %8 {strides = array<i32>} : memref<8x16x16xf32, #tpu.memory_space<vmem>>, vector<8x16x16xf32>,
    return
  }
  func.func @transform_0(%arg0: i32) -> (i32, i32, i32) {
    %c0_i32 = arith.constant 0 : i32
    %c0_i32_0 = arith.constant 0 : i32
    %c0_i32_1 = arith.constant 0 : i32
    return %arg0, %c0_i32, %c0_i32_0 : i32, i32, i32
  }
  func.func @transform_1(%arg0: i32) -> (i32, i32) {
    %c0_i32 = arith.constant 0 : i32
    %c0_i32_0 = arith.constant 0 : i32
    %c0_i32_1 = arith.constant 0 : i32
    return %c0_i32, %c0_i32_0 : i32, i32
  }
  func.func @transform_2(%arg0: i32) -> (i32, i32) {
    %c0_i32 = arith.constant 0 : i32
    %c0_i32_0 = arith.constant 0 : i32
    %c0_i32_1 = arith.constant 0 : i32
    return %c0_i32, %c0_i32_0 : i32, i32
  }
  func.func @transform_3(%arg0: i32) -> (i32, i32, i32) {
    %c0_i32 = arith.constant 0 : i32
    %c0_i32_0 = arith.constant 0 : i32
    %c0_i32_1 = arith.constant 0 : i32
    return %arg0, %c0_i32, %c0_i32_0 : i32, i32, i32
  }
}

</mosaic_0001>

<bundles_post_ra>
// kernel: fallback.1
= control target key start
LH: loop header
LB: loop body
LE: loop exit
PB: predicated region body
PF: predicated region fallthrough
CT: control target
= control target key end

     0   :  { %9 = vsyncpa [#allocation4], 0  ;;  %s543_s0 = inlined_call_operand.hbm [shape: f32[8,16,16], index: 0, kind: input, shape index: {}]   ;;  %s544_s1 = inlined_call_operand.vmem [shape: f32[1,16], index: 1, kind: input, shape index: {}]   ;;  %s545_s2 = inlined_call_operand.<no memory space> [shape: f32[1,1], index: 2, kind: input, shape index: {}]   ;;  %s546_s3 = inlined_call_operand.hbm [shape: f32[8,16,16], index: 3, kind: output, shape index: {}]  }
   0x1   :  { %10 = vsyncpa [#allocation5], 0  ;;  %s431_s12 = smov [#allocation3]   ;;  %s383_s16 = scalar_lea.hbm %s543_s0, 2048 }
   0x2   :  { %s16_s13 = sshll.u32 %s431_s12, 4  ;;  %p384_p0 = scmp.ne.s32.totalorder %s543_s0, %s383_s16  ;;  %s17_s13 = int_to_ptr.vmem [resolvable:$true] %s16_s13 }
   0x3   :  { %p387_p1 = scmp.lt.u32.totalorder %s383_s16, %s543_s0 }
   0x5   :  { %p389_p2 = pnand %p387_p1, %p384_p0 }
   0x7   :  { %392 = shalt.err (!%p389_p2)
}
   0x8   :  { %s393_s21 = scalar_lea.vmem %s17_s13, 2048  ;;  %p398_p4 = scmp.lt.s32.totalorder %s17_s13, %s17_s13 }
   0x9   :  { %p394_p3 = scmp.ne.s32.totalorder %s17_s13, %s393_s21  ;;  %p399_p5 = scmp.lt.s32.totalorder %s393_s21, %s393_s21 }
   0xb   :  { %p400_p6 = por %p399_p5, %p398_p4 }
   0xd   :  { %p401_p7 = pnand %p400_p6, %p394_p3 }
   0xf   :  { %404 = shalt.err (!%p401_p7)
}
  0x10   :  { %s432_s22 = smov 128   ;;  %s433_s23 = smov 8  }
  0x11   :  { %22 = dma.hbm_to_vmem [thread:$0]  %s543_s0, 2048, %s17_s13, [#allocation4], %s432_s22, %s432_s22, %s433_s23  }
  0x12   :  { %427 = dma.done.wait [#allocation4], 2048  }
  0x13   :  { %428 = vsyncadd [#allocation4], 4294965248  ;;  %v32_v0 = vld [vmem:[#allocation3 + $0x10] sm:$0xff]  ;;  %v30_v1 = vld [vmem:[#allocation3] sm:$0xff]  ;;  %v478_v17 = vstv %s545_s2  ;;  %vm343_vm0 = vcmask 130048  }
  0x14   :  { %78 = vxpose.xlu1.b32.start [1/2] (short) (narrow) %v32_v0, 16  ;;  %46 = vxpose.xlu0.b32.start [1/2] (short) (narrow) %v30_v1, 16  ;;  %v33_v2 = vld [vmem:[#allocation3 + $0x18] sm:$0xff]  ;;  %v31_v3 = vld [vmem:[#allocation3 + $0x8] sm:$0xff]  ;;  %v36_v4 = vld [vmem:[#allocation3 + $0x30] sm:$0xff] }
  0x15   :  { %v34_v5 = vld [vmem:[#allocation3 + $0x20] sm:$0xff]  ;;  %v37_v6 = vld [vmem:[#allocation3 + $0x38] sm:$0xff]  ;;  %v35_v7 = vld [vmem:[#allocation3 + $0x28] sm:$0xff] }
  0x16   :  { %v40_v8 = vld [vmem:[#allocation3 + $0x50] sm:$0xff]  ;;  %v38_v9 = vld [vmem:[#allocation3 + $0x40] sm:$0xff]  ;;  %v41_v10 = vld [vmem:[#allocation3 + $0x58] sm:$0xff] }
  0x17   :  { %v39_v11 = vld [vmem:[#allocation3 + $0x48] sm:$0xff]  ;;  %v44_v12 = vld [vmem:[#allocation3 + $0x70] sm:$0xff]  ;;  %v42_v13 = vld [vmem:[#allocation3 + $0x60] sm:$0xff] }
  0x18   :  { %79 = vxpose.xlu1.b32.end [2/2] (short) (narrow) %v33_v2, 16  ;;  %47 = vxpose.xlu0.b32.end [2/2] (short) (narrow) %v31_v3, 16  ;;  %v45_v14 = vld [vmem:[#allocation3 + $0x78] sm:$0xff]  ;;  %v43_v15 = vld [vmem:[#allocation3 + $0x68] sm:$0xff]  ;;  %v473_v16 = vld [vmem:[%s544_s1] ss:$0 sm:$0xff] }
  0x19   :  { %s434_s1 = smov [#allocation6]  }
  0x1a   :  { %s365_s2 = sshll.u32 %s434_s1, 4  ;;  %s366_s2 = int_to_ptr.vmem [resolvable:$true] %s365_s2 }
  0x1b   :  { %s405_s29 = scalar_lea.vmem %s366_s2, 2048  ;;  %p410_p9 = scmp.lt.s32.totalorder %s366_s2, %s366_s2 }
  0x1c   :  { %142 = vxpose.xlu1.b32.start [1/2] (short) (narrow) %v36_v4, 16  ;;  %110 = vxpose.xlu0.b32.start [1/2] (short) (narrow) %v34_v5, 16  ;;  %p406_p8 = scmp.ne.s32.totalorder %s366_s2, %s405_s29  ;;  %p411_p10 = scmp.lt.s32.totalorder %s405_s29, %s405_s29 }
  0x1e   :  { %p412_p11 = por %p411_p10, %p410_p9 }
  0x20   :  { %143 = vxpose.xlu1.b32.end [2/2] (short) (narrow) %v37_v6, 16  ;;  %111 = vxpose.xlu0.b32.end [2/2] (short) (narrow) %v35_v7, 16  ;;  %p413_p12 = pnand %p412_p11, %p406_p8 }
  0x24   :  { %206 = vxpose.xlu1.b32.start [1/2] (short) (narrow) %v40_v8, 16  ;;  %174 = vxpose.xlu0.b32.start [1/2] (short) (narrow) %v38_v9, 16 }
  0x28   :  { %207 = vxpose.xlu1.b32.end [2/2] (short) (narrow) %v41_v10, 16  ;;  %175 = vxpose.xlu0.b32.end [2/2] (short) (narrow) %v39_v11, 16 }
  0x2c   :  { %270 = vxpose.xlu1.b32.start [1/2] (short) (narrow) %v44_v12, 16  ;;  %238 = vxpose.xlu0.b32.start [1/2] (short) (narrow) %v42_v13, 16 }
  0x30   :  { %271 = vxpose.xlu1.b32.end [2/2] (short) (narrow) %v45_v14, 16  ;;  %239 = vxpose.xlu0.b32.end [2/2] (short) (narrow) %v43_v15, 16 }
  0x94   :  { %v94_v18 = vpop.trf.xlu1  ;;  %v62_v19 = vpop.trf.xlu0 }
  0x95   :  { %v311_v20 = vmul.f32 %v473_v16, %v94_v18  ;;  %v309_v21 = vmul.f32 %v473_v16, %v62_v19 }
  0x97   :  { %v329_v22 = vadd.f32 %v478_v17, %v311_v20  ;;  %v327_v23 = vadd.f32 %v478_v17, %v309_v21 }
  0x98   :  { %v95_v24 = vpop.trf.xlu1  ;;  %v63_v25 = vpop.trf.xlu0 }
  0x99   :  { %346 = vst.msk [vmem:[#allocation6 + $0x10] sm:$0xff] %vm343_vm0, %v329_v22  ;;  %344 = vst.msk [vmem:[#allocation6] sm:$0xff] %vm343_vm0, %v327_v23  ;;  %v312_v26 = vmul.f32 %v473_v16, %v95_v24  ;;  %v310_v27 = vmul.f32 %v473_v16, %v63_v25 }
  0x9b   :  { %v330_v28 = vadd.f32 %v478_v17, %v312_v26  ;;  %v328_v29 = vadd.f32 %v478_v17, %v310_v27 }
  0x9c   :  { %v158_v30 = vpop.trf.xlu1  ;;  %v126_v31 = vpop.trf.xlu0 }
  0x9d   :  { %347 = vst.msk [vmem:[#allocation6 + $0x18] sm:$0xff] %vm343_vm0, %v330_v28  ;;  %345 = vst.msk [vmem:[#allocation6 + $0x8] sm:$0xff] %vm343_vm0, %v328_v29  ;;  %v315_v32 = vmul.f32 %v473_v16, %v158_v30  ;;  %v313_v33 = vmul.f32 %v473_v16, %v126_v31 }
  0x9f   :  { %v333_v34 = vadd.f32 %v478_v17, %v315_v32  ;;  %v331_v35 = vadd.f32 %v478_v17, %v313_v33 }
  0xa0   :  { %v159_v36 = vpop.trf.xlu1  ;;  %v127_v37 = vpop.trf.xlu0 }
  0xa1   :  { %350 = vst.msk [vmem:[#allocation6 + $0x30] sm:$0xff] %vm343_vm0, %v333_v34  ;;  %348 = vst.msk [vmem:[#allocation6 + $0x20] sm:$0xff] %vm343_vm0, %v331_v35  ;;  %v316_v38 = vmul.f32 %v473_v16, %v159_v36  ;;  %v314_v39 = vmul.f32 %v473_v16, %v127_v37 }
  0xa3   :  { %v334_v40 = vadd.f32 %v478_v17, %v316_v38  ;;  %v332_v41 = vadd.f32 %v478_v17, %v314_v39 }
  0xa4   :  { %v222_v42 = vpop.trf.xlu1  ;;  %v190_v43 = vpop.trf.xlu0 }
  0xa5   :  { %351 = vst.msk [vmem:[#allocation6 + $0x38] sm:$0xff] %vm343_vm0, %v334_v40  ;;  %349 = vst.msk [vmem:[#allocation6 + $0x28] sm:$0xff] %vm343_vm0, %v332_v41  ;;  %v319_v44 = vmul.f32 %v473_v16, %v222_v42  ;;  %v317_v45 = vmul.f32 %v473_v16, %v190_v43 }
  0xa7   :  { %v337_v46 = vadd.f32 %v478_v17, %v319_v44  ;;  %v335_v47 = vadd.f32 %v478_v17, %v317_v45 }
  0xa8   :  { %v223_v48 = vpop.trf.xlu1  ;;  %v191_v49 = vpop.trf.xlu0 }
  0xa9   :  { %354 = vst.msk [vmem:[#allocation6 + $0x50] sm:$0xff] %vm343_vm0, %v337_v46  ;;  %352 = vst.msk [vmem:[#allocation6 + $0x40] sm:$0xff] %vm343_vm0, %v335_v47  ;;  %v320_v50 = vmul.f32 %v473_v16, %v223_v48  ;;  %v318_v51 = vmul.f32 %v473_v16, %v191_v49 }
  0xab   :  { %v338_v52 = vadd.f32 %v478_v17, %v320_v50  ;;  %v336_v53 = vadd.f32 %v478_v17, %v318_v51 }
  0xac   :  { %v286_v54 = vpop.trf.xlu1  ;;  %v254_v55 = vpop.trf.xlu0 }
  0xad   :  { %355 = vst.msk [vmem:[#allocation6 + $0x58] sm:$0xff] %vm343_vm0, %v338_v52  ;;  %353 = vst.msk [vmem:[#allocation6 + $0x48] sm:$0xff] %vm343_vm0, %v336_v53  ;;  %v323_v56 = vmul.f32 %v473_v16, %v286_v54  ;;  %v321_v57 = vmul.f32 %v473_v16, %v254_v55 }
  0xaf   :  { %v341_v58 = vadd.f32 %v478_v17, %v323_v56  ;;  %v339_v59 = vadd.f32 %v478_v17, %v321_v57 }
  0xb0   :  { %v287_v60 = vpop.trf.xlu1  ;;  %v255_v61 = vpop.trf.xlu0 }
  0xb1   :  { %358 = vst.msk [vmem:[#allocation6 + $0x70] sm:$0xff] %vm343_vm0, %v341_v58  ;;  %356 = vst.msk [vmem:[#allocation6 + $0x60] sm:$0xff] %vm343_vm0, %v339_v59  ;;  %v324_v62 = vmul.f32 %v473_v16, %v287_v60  ;;  %v322_v63 = vmul.f32 %v473_v16, %v255_v61 }
  0xb3   :  { %v342_v0 = vadd.f32 %v478_v17, %v324_v62  ;;  %v340_v1 = vadd.f32 %v478_v17, %v322_v63 }
  0xb5   :  { %359 = vst.msk [vmem:[#allocation6 + $0x78] sm:$0xff] %vm343_vm0, %v342_v0  ;;  %357 = vst.msk [vmem:[#allocation6 + $0x68] sm:$0xff] %vm343_vm0, %v340_v1 }
  0xb6   :  { %416 = shalt.err (!%p413_p12)
}
  0xb7   :  { %s417_s5 = scalar_lea.hbm %s546_s3, 2048 }
  0xb8   :  { %p418_p13 = scmp.ne.s32.totalorder %s546_s3, %s417_s5  ;;  %p421_p0 = scmp.lt.u32.totalorder %s417_s5, %s546_s3 }
  0xba   :  { %p423_p1 = pnand %p421_p0, %p418_p13 }
  0xbc   :  { %426 = shalt.err (!%p423_p1)
}
  0xbd   :  { %371 = dma.vmem_to_hbm [thread:$0]  %s366_s2, 2048, %s546_s3, [#allocation5], %s432_s22, %s432_s22, %s433_s23  }
  0xbe   :  { %429 = dma.done.wait [#allocation5], 2048  }
  0xbf   :  { %430 = vsyncadd [#allocation5], 4294965248 }
  0xc0   :  { %375 = vsyncpa [#allocation4], 1 }
  0xc1   :  { %376 = vsyncpa [#allocation5], 1 }

</bundles_post_ra>
